<compile_context>
chip_gen: v7x
topology: tpu7x:2x2x1
jax: 0.10.0
libtpu: 0.0.40
codegen_flags: <defaults>
</compile_context>

<pallas_src>
import functools

import jax
import jax.numpy as jnp
from jax.experimental import pallas as pl
from jax.experimental.pallas import tpu as pltpu

LANE = 128  # TPU lane width; hidden feature dims are padded to multiples of this.


# ----------------------------------------------------------------------------
# Kernel
# ----------------------------------------------------------------------------
def discriminator_kernel(x_ref,
                         w1_ref, b1_ref,
                         w2_ref, b2_ref,
                         w3_ref, b3_ref,
                         w4_ref, b4_ref,
                         o_ref):
    """Fused forward for one batch tile.

    x_ref : (TB, d_in)  f32   raw input rows (cast to bf16 in-kernel)
    w1    : (d_in, H1)  bf16  (PyTorch W1.T; hidden dims lane-padded)
    w2    : (H1, H2)    bf16
    w3    : (H2, H3)    bf16
    w4    : (1, H3)     bf16  (PyTorch fc4.weight row, lane-padded)
    b1..b3: (1, HN)     f32 ; b4: (1, 1) f32
    o_ref : (1, TB)     f32   transposed sigmoid outputs (lane-dense row)
    """

    def leaky_relu(v):  # f32 elementwise (VPU)
        return jnp.where(v > 0, v, 0.2 * v)

    # In-kernel cast; hidden under the x DMA.
    x = x_ref[...].astype(jnp.bfloat16)

    # fc1 + LeakyReLU
    h = jnp.dot(x, w1_ref[...], preferred_element_type=jnp.float32)
    h = leaky_relu(h + b1_ref[...]).astype(jnp.bfloat16)

    # fc2 + LeakyReLU
    h = jnp.dot(h, w2_ref[...], preferred_element_type=jnp.float32)
    h = leaky_relu(h + b2_ref[...]).astype(jnp.bfloat16)

    # fc3 + LeakyReLU
    h = jnp.dot(h, w3_ref[...], preferred_element_type=jnp.float32)
    h = leaky_relu(h + b3_ref[...]).astype(jnp.bfloat16)          # (TB, H3)

    # fc4, computed transposed: (1, H3) . (TB, H3)^T -> (1, TB) logits row.
    logits = jax.lax.dot_general(
        w4_ref[...], h,
        dimension_numbers=(((1,), (1,)), ((), ())),
        preferred_element_type=jnp.float32) + b4_ref[...]

    # sigmoid = 1 / (1 + exp(-logits)); exp and reciprocal both on the EUP.
    e = jnp.exp(-logits)
    o_ref[...] = pl.reciprocal(1.0 + e, approx=True).astype(o_ref.dtype)


# ----------------------------------------------------------------------------
# Host-side helpers
# ----------------------------------------------------------------------------
def _round_up(n, m):
    return ((n + m - 1) // m) * m


def _pad2d(a, rows, cols):
    r, c = a.shape
    return jnp.pad(a, ((0, rows - r), (0, cols - c)))


def prepare_padded_params(params_f32, d_input_dim, d_hidden_dim):
    """Lane-pad hidden feature dims; weights -> bf16, biases -> f32.

    w1..w3 stored as (in, out) (= PyTorch W.T); w4 stored as a (1, H3) row
    (= PyTorch fc4.weight, lane-padded).  fc1's K dim is NOT padded: the
    kernel contracts over the true d_input_dim.
    """
    h1, h2, h3 = d_hidden_dim, d_hidden_dim // 2, d_hidden_dim // 4
    n1, n2, n3 = (_round_up(h, LANE) for h in (h1, h2, h3))

    p = {}
    p["w1"] = _pad2d(params_f32["w1"], d_input_dim, n1).astype(jnp.bfloat16)
    p["b1"] = _pad2d(params_f32["b1"], 1, n1).astype(jnp.float32)
    p["w2"] = _pad2d(params_f32["w2"], n1, n2).astype(jnp.bfloat16)
    p["b2"] = _pad2d(params_f32["b2"], 1, n2).astype(jnp.float32)
    p["w3"] = _pad2d(params_f32["w3"], n2, n3).astype(jnp.bfloat16)
    p["b3"] = _pad2d(params_f32["b3"], 1, n3).astype(jnp.float32)
    p["w4"] = _pad2d(params_f32["w4"].T, 1, n3).astype(jnp.bfloat16)   # (1, H3)
    p["b4"] = params_f32["b4"].astype(jnp.float32)                     # (1, 1)
    return p


@functools.partial(jax.jit, static_argnames=("tile_b",))
def discriminator_forward(x, padded_params, *, tile_b=128):
    """x: (B, d_input_dim) f32. Returns (B, 1) f32 sigmoid outputs."""
    B, d_in = x.shape
    if B == 0:
        return jnp.zeros((0, 1), jnp.float32)

    n1 = padded_params["w1"].shape[1]
    n2 = padded_params["w2"].shape[1]
    n3 = padded_params["w3"].shape[1]

    # Pad batch only if it is not already a tile multiple (demo: no pad).
    b_pad = _round_up(B, tile_b)
    x_in = x if b_pad == B else jnp.pad(x, ((0, b_pad - B), (0, 0)))
    n_tiles = b_pad // tile_b

    def resident(shape):  # constant index_map -> fetched once, VMEM-resident
        return pl.BlockSpec(shape, lambda i: (0, 0))

    in_specs = [pl.BlockSpec((tile_b, d_in), lambda i: (i, 0))]
    for idx in range(1, 5):
        in_specs.append(resident(padded_params[f"w{idx}"].shape))
        in_specs.append(resident(padded_params[f"b{idx}"].shape))

    flops = 2 * b_pad * (d_in * n1 + n1 * n2 + n2 * n3 + n3 * 1)
    bytes_accessed = (
        x_in.size * 4
        + sum(padded_params[f"w{i}"].size * 2 + padded_params[f"b{i}"].size * 4
              for i in range(1, 5))
        + b_pad * 4)

    out_row = pl.pallas_call(
        discriminator_kernel,
        out_shape=jax.ShapeDtypeStruct((1, b_pad), jnp.float32),
        grid=(n_tiles,),
        in_specs=in_specs,
        out_specs=pl.BlockSpec((1, tile_b), lambda i: (0, i)),
        compiler_params=pltpu.CompilerParams(
            dimension_semantics=("parallel",)),
        cost_estimate=pl.CostEstimate(
            flops=flops,
            transcendentals=2 * b_pad,          # exp + reciprocal per row
            bytes_accessed=bytes_accessed),
    )(x_in,
      padded_params["w1"], padded_params["b1"],
      padded_params["w2"], padded_params["b2"],
      padded_params["w3"], padded_params["b3"],
      padded_params["w4"], padded_params["b4"])

    # Transposed lane-dense row -> (B, 1) column (tiny, B*4 bytes).
    return out_row[0, :B][:, None]


# ----------------------------------------------------------------------------
# Parameter init (PyTorch nn.Linear convention; stored transposed as (in, out))
# ----------------------------------------------------------------------------
def init_discriminator_params(key, d_input_dim, d_hidden_dim):
    dims = [
        (d_input_dim, d_hidden_dim),             # fc1
        (d_hidden_dim, d_hidden_dim // 2),       # fc2
        (d_hidden_dim // 2, d_hidden_dim // 4),  # fc3
        (d_hidden_dim // 4, 1),                  # fc4
    ]
    params = {}
    for idx, (d_in, d_out) in enumerate(dims, start=1):
        key, kw, kb = jax.random.split(key, 3)
        bound = 1.0 / jnp.sqrt(d_in)
        params[f"w{idx}"] = jax.random.uniform(
            kw, (d_in, d_out), jnp.float32, minval=-bound, maxval=bound)
        params[f"b{idx}"] = jax.random.uniform(
            kb, (1, d_out), jnp.float32, minval=-bound, maxval=bound)
    return params


# ----------------------------------------------------------------------------
# Pure-JAX reference mirroring the kernel's bf16-operand / f32-accumulate math
# ----------------------------------------------------------------------------
def discriminator_reference(x, padded_params):
    def leaky_relu(v):
        return jnp.where(v > 0, v, 0.2 * v)

    def bf(v):
        return v.astype(jnp.bfloat16).astype(jnp.float32)

    h = bf(x)
    for idx in range(1, 4):
        w = padded_params[f"w{idx}"].astype(jnp.float32)
        b = padded_params[f"b{idx}"]
        h = bf(leaky_relu(h @ w + b))
    w4 = padded_params["w4"].astype(jnp.float32)      # (1, H3)
    logits = h @ w4.T + padded_params["b4"]           # (B, 1)
    return 1.0 / (1.0 + jnp.exp(-logits))


# ----------------------------------------------------------------------------
if __name__ == "__main__":
    d_input_dim = 64
    d_hidden_dim = 128    # hidden sizes 128, 64, 32; output 1
    batch = 256
    tile_b = 128          # grid=(2,), "parallel" -> both v7x TCs busy.
                          # On single-TC v5e/v6e, tile_b=batch gives grid=(1,).

    key = jax.random.PRNGKey(0)
    key, kx = jax.random.split(key)
    x = jax.random.normal(kx, (batch, d_input_dim), jnp.float32)

    params = init_discriminator_params(key, d_input_dim, d_hidden_dim)
    padded_params = prepare_padded_params(params, d_input_dim, d_hidden_dim)

    out = discriminator_forward(x, padded_params, tile_b=tile_b)
    out = jax.block_until_ready(out)

    ref = discriminator_reference(x, padded_params)
    assert out.shape == (batch, 1), out.shape
    assert jnp.all((out > -1e-3) & (out < 1.0 + 1e-3)), "sigmoid output out of range"
    assert jnp.allclose(out, ref, atol=2e-3, rtol=2e-3), "Pallas output mismatch vs reference"

    print("KERNEL_OK")
</pallas_src>

<mosaic_0001>
module attributes {stable_mosaic.version = 11 : i64} {
  func.func @discriminator_kernel(%arg0: i32, %arg1: memref<128x64xf32, #tpu.memory_space<vmem>>, %arg2: memref<64x128xbf16, #tpu.memory_space<vmem>>, %arg3: memref<1x128xf32, #tpu.memory_space<vmem>>, %arg4: memref<128x128xbf16, #tpu.memory_space<vmem>>, %arg5: memref<1x128xf32, #tpu.memory_space<vmem>>, %arg6: memref<128x128xbf16, #tpu.memory_space<vmem>>, %arg7: memref<1x128xf32, #tpu.memory_space<vmem>>, %arg8: memref<1x128xbf16, #tpu.memory_space<vmem>>, %arg9: memref<1x1xf32, #tpu.memory_space<vmem>>, %arg10: memref<1x128xf32, #tpu.memory_space<vmem>>) attributes {dimension_semantics = [#tpu.dimension_semantics<parallel>], iteration_bounds = array<i64: 2>, scalar_prefetch = 0 : i64, scratch_operands = 0 : i64, tpu.core_type = #tpu.core_type<tc>, window_params = [{transform_indices = @transform_0, window_bounds = array<i64: 128, 64>}, {pipeline_mode = #tpu.pipeline_mode<synchronous>, transform_indices = @transform_1, window_bounds = array<i64: 64, 128>}, {pipeline_mode = #tpu.pipeline_mode<synchronous>, transform_indices = @transform_2, window_bounds = array<i64: 1, 128>}, {pipeline_mode = #tpu.pipeline_mode<synchronous>, transform_indices = @transform_3, window_bounds = array<i64: 128, 128>}, {pipeline_mode = #tpu.pipeline_mode<synchronous>, transform_indices = @transform_4, window_bounds = array<i64: 1, 128>}, {pipeline_mode = #tpu.pipeline_mode<synchronous>, transform_indices = @transform_5, window_bounds = array<i64: 128, 128>}, {pipeline_mode = #tpu.pipeline_mode<synchronous>, transform_indices = @transform_6, window_bounds = array<i64: 1, 128>}, {pipeline_mode = #tpu.pipeline_mode<synchronous>, transform_indices = @transform_7, window_bounds = array<i64: 1, 128>}, {pipeline_mode = #tpu.pipeline_mode<synchronous>, transform_indices = @transform_8, window_bounds = array<i64: 1, 1>}, {transform_indices = @transform_9, window_bounds = array<i64: 1, 128>}]} {
    %c0 = arith.constant 0 : index
    %c0_0 = arith.constant 0 : index
    %0 = vector.load %arg1[%c0, %c0_0] : memref<128x64xf32, #tpu.memory_space<vmem>>, vector<128x64xf32>
    %1 = arith.truncf %0 : vector<128x64xf32> to vector<128x64xbf16>
    %c0_1 = arith.constant 0 : index
    %c0_2 = arith.constant 0 : index
    %2 = vector.load %arg2[%c0_1, %c0_2] : memref<64x128xbf16, #tpu.memory_space<vmem>>, vector<64x128xbf16>
    %cst = arith.constant dense<0.000000e+00> : vector<128x128xf32>
    %3 = tpu.matmul %1, %2, %cst {dimension_numbers = #tpu.dot_dimension_numbers<[1], [0], [0], [1], [0, 0, 1, 1], [], []>} : vector<128x64xbf16>, vector<64x128xbf16>, vector<128x128xf32> -> vector<128x128xf32>
    %c0_3 = arith.constant 0 : index
    %c0_4 = arith.constant 0 : index
    %4 = vector.load %arg3[%c0_3, %c0_4] : memref<1x128xf32, #tpu.memory_space<vmem>>, vector<1x128xf32>
    %5 = vector.broadcast %4 : vector<1x128xf32> to vector<128x128xf32>
    %6 = arith.addf %3, %5 : vector<128x128xf32>
    %cst_5 = arith.constant 0.000000e+00 : f32
    %7 = vector.broadcast %cst_5 : f32 to vector<128x128xf32>
    %8 = arith.cmpf ogt, %6, %7 : vector<128x128xf32>
    %cst_6 = arith.constant 2.000000e-01 : f32
    %9 = vector.broadcast %cst_6 : f32 to vector<128x128xf32>
    %10 = arith.mulf %9, %6 : vector<128x128xf32>
    %11 = arith.select %8, %6, %10 : vector<128x128xi1>, vector<128x128xf32>
    %12 = arith.truncf %11 : vector<128x128xf32> to vector<128x128xbf16>
    %c0_7 = arith.constant 0 : index
    %c0_8 = arith.constant 0 : index
    %13 = vector.load %arg4[%c0_7, %c0_8] : memref<128x128xbf16, #tpu.memory_space<vmem>>, vector<128x128xbf16>
    %cst_9 = arith.constant dense<0.000000e+00> : vector<128x128xf32>
    %14 = tpu.matmul %12, %13, %cst_9 {dimension_numbers = #tpu.dot_dimension_numbers<[1], [0], [0], [1], [0, 0, 1, 1], [], []>} : vector<128x128xbf16>, vector<128x128xbf16>, vector<128x128xf32> -> vector<128x128xf32>
    %c0_10 = arith.constant 0 : index
    %c0_11 = arith.constant 0 : index
    %15 = vector.load %arg5[%c0_10, %c0_11] : memref<1x128xf32, #tpu.memory_space<vmem>>, vector<1x128xf32>
    %16 = vector.broadcast %15 : vector<1x128xf32> to vector<128x128xf32>
    %17 = arith.addf %14, %16 : vector<128x128xf32>
    %cst_12 = arith.constant 0.000000e+00 : f32
    %18 = vector.broadcast %cst_12 : f32 to vector<128x128xf32>
    %19 = arith.cmpf ogt, %17, %18 : vector<128x128xf32>
    %cst_13 = arith.constant 2.000000e-01 : f32
    %20 = vector.broadcast %cst_13 : f32 to vector<128x128xf32>
    %21 = arith.mulf %20, %17 : vector<128x128xf32>
    %22 = arith.select %19, %17, %21 : vector<128x128xi1>, vector<128x128xf32>
    %23 = arith.truncf %22 : vector<128x128xf32> to vector<128x128xbf16>
    %c0_14 = arith.constant 0 : index
    %c0_15 = arith.constant 0 : index
    %24 = vector.load %arg6[%c0_14, %c0_15] : memref<128x128xbf16, #tpu.memory_space<vmem>>, vector<128x128xbf16>
    %cst_16 = arith.constant dense<0.000000e+00> : vector<128x128xf32>
    %25 = tpu.matmul %23, %24, %cst_16 {dimension_numbers = #tpu.dot_dimension_numbers<[1], [0], [0], [1], [0, 0, 1, 1], [], []>} : vector<128x128xbf16>, vector<128x128xbf16>, vector<128x128xf32> -> vector<128x128xf32>
    %c0_17 = arith.constant 0 : index
    %c0_18 = arith.constant 0 : index
    %26 = vector.load %arg7[%c0_17, %c0_18] : memref<1x128xf32, #tpu.memory_space<vmem>>, vector<1x128xf32>
    %27 = vector.broadcast %26 : vector<1x128xf32> to vector<128x128xf32>
    %28 = arith.addf %25, %27 : vector<128x128xf32>
    %cst_19 = arith.constant 0.000000e+00 : f32
    %29 = vector.broadcast %cst_19 : f32 to vector<128x128xf32>
    %30 = arith.cmpf ogt, %28, %29 : vector<128x128xf32>
    %cst_20 = arith.constant 2.000000e-01 : f32
    %31 = vector.broadcast %cst_20 : f32 to vector<128x128xf32>
    %32 = arith.mulf %31, %28 : vector<128x128xf32>
    %33 = arith.select %30, %28, %32 : vector<128x128xi1>, vector<128x128xf32>
    %34 = arith.truncf %33 : vector<128x128xf32> to vector<128x128xbf16>
    %c0_21 = arith.constant 0 : index
    %c0_22 = arith.constant 0 : index
    %35 = vector.load %arg8[%c0_21, %c0_22] : memref<1x128xbf16, #tpu.memory_space<vmem>>, vector<1x128xbf16>
    %cst_23 = arith.constant dense<0.000000e+00> : vector<1x128xf32>
    %36 = tpu.matmul %35, %34, %cst_23 {dimension_numbers = #tpu.dot_dimension_numbers<[1], [1], [0], [0], [0, 0, 1, 0], [], []>} : vector<1x128xbf16>, vector<128x128xbf16>, vector<1x128xf32> -> vector<1x128xf32>
    %c0_24 = arith.constant 0 : index
    %c0_25 = arith.constant 0 : index
    %37 = vector.load %arg9[%c0_24, %c0_25] : memref<1x1xf32, #tpu.memory_space<vmem>>, vector<1x1xf32>
    %38 = vector.broadcast %37 : vector<1x1xf32> to vector<1x128xf32>
    %39 = arith.addf %36, %38 : vector<1x128xf32>
    %cst_26 = arith.constant 0.000000e+00 : f32
    %40 = vector.broadcast %cst_26 : f32 to vector<1x128xf32>
    %41 = arith.subf %40, %39 : vector<1x128xf32>
    %42 = math.exp %41 : vector<1x128xf32>
    %cst_27 = arith.constant 1.000000e+00 : f32
    %43 = vector.broadcast %cst_27 : f32 to vector<1x128xf32>
    %44 = arith.addf %43, %42 : vector<1x128xf32>
    %45 = tpu.reciprocal %44 {approx = true} : vector<1x128xf32> -> vector<1x128xf32>
    %c0_28 = arith.constant 0 : index
    %c0_29 = arith.constant 0 : index
    %46 = vector.load %arg10[%c0_28, %c0_29] : memref<1x128xf32, #tpu.memory_space<vmem>>, vector<1x128xf32>
    tpu.vector_store %arg10[%c0_28, %c0_29], %45 {strides = array<i32>} : memref<1x128xf32, #tpu.memory_space<vmem>>, vector<1x128xf32>,
    return
  }
  func.func @transform_0(%arg0: i32) -> (i32, i32) {
    %c0_i32 = arith.constant 0 : i32
    %c0_i32_0 = arith.constant 0 : i32
    return %arg0, %c0_i32 : i32, i32
  }
  func.func @transform_1(%arg0: i32) -> (i32, i32) {
    %c0_i32 = arith.constant 0 : i32
    %c0_i32_0 = arith.constant 0 : i32
    %c0_i32_1 = arith.constant 0 : i32
    return %c0_i32, %c0_i32_0 : i32, i32
  }
  func.func @transform_2(%arg0: i32) -> (i32, i32) {
    %c0_i32 = arith.constant 0 : i32
    %c0_i32_0 = arith.constant 0 : i32
    %c0_i32_1 = arith.constant 0 : i32
    return %c0_i32, %c0_i32_0 : i32, i32
  }
  func.func @transform_3(%arg0: i32) -> (i32, i32) {
    %c0_i32 = arith.constant 0 : i32
    %c0_i32_0 = arith.constant 0 : i32
    %c0_i32_1 = arith.constant 0 : i32
    return %c0_i32, %c0_i32_0 : i32, i32
  }
  func.func @transform_4(%arg0: i32) -> (i32, i32) {
    %c0_i32 = arith.constant 0 : i32
    %c0_i32_0 = arith.constant 0 : i32
    %c0_i32_1 = arith.constant 0 : i32
    return %c0_i32, %c0_i32_0 : i32, i32
  }
  func.func @transform_5(%arg0: i32) -> (i32, i32) {
    %c0_i32 = arith.constant 0 : i32
    %c0_i32_0 = arith.constant 0 : i32
    %c0_i32_1 = arith.constant 0 : i32
    return %c0_i32, %c0_i32_0 : i32, i32
  }
  func.func @transform_6(%arg0: i32) -> (i32, i32) {
    %c0_i32 = arith.constant 0 : i32
    %c0_i32_0 = arith.constant 0 : i32
    %c0_i32_1 = arith.constant 0 : i32
    return %c0_i32, %c0_i32_0 : i32, i32
  }
  func.func @transform_7(%arg0: i32) -> (i32, i32) {
    %c0_i32 = arith.constant 0 : i32
    %c0_i32_0 = arith.constant 0 : i32
    %c0_i32_1 = arith.constant 0 : i32
    return %c0_i32, %c0_i32_0 : i32, i32
  }
  func.func @transform_8(%arg0: i32) -> (i32, i32) {
    %c0_i32 = arith.constant 0 : i32
    %c0_i32_0 = arith.constant 0 : i32
    %c0_i32_1 = arith.constant 0 : i32
    return %c0_i32, %c0_i32_0 : i32, i32
  }
  func.func @transform_9(%arg0: i32) -> (i32, i32) {
    %c0_i32 = arith.constant 0 : i32
    %c0_i32_0 = arith.constant 0 : i32
    return %c0_i32, %arg0 : i32, i32
  }
}

</mosaic_0001>

<bundles_post_ra>
// kernel: discriminator_forward.1
= control target key start
LH: loop header
LB: loop body
LE: loop exit
PB: predicated region body
PF: predicated region fallthrough
CT: control target
= control target key end

     0   :  { %s1798_s0 = inlined_call_operand.vmem [shape: f32[256,64], index: 0, kind: input, shape index: {}]   ;;  %s1799_s1 = inlined_call_operand.vmem [shape: bf16[64,128], index: 1, kind: input, shape index: {}]   ;;  %s1800_s2 = inlined_call_operand.vmem [shape: f32[1,128], index: 2, kind: input, shape index: {}]   ;;  %s1801_s3 = inlined_call_operand.vmem [shape: bf16[128,128], index: 3, kind: input, shape index: {}]   ;;  %s1802_s4 = inlined_call_operand.vmem [shape: f32[1,128], index: 4, kind: input, shape index: {}]   ;;  %s1803_s5 = inlined_call_operand.vmem [shape: bf16[128,128], index: 5, kind: input, shape index: {}]   ;;  %s1804_s6 = inlined_call_operand.vmem [shape: f32[1,128], index: 6, kind: input, shape index: {}]   ;;  %s1805_s7 = inlined_call_operand.vmem [shape: bf16[1,128], index: 7, kind: input, shape index: {}]   ;;  %s1806_s8 = inlined_call_operand.<no memory space> [shape: f32[1,1], index: 8, kind: input, shape index: {}]   ;;  %s1807_s9 = inlined_call_operand.hbm [shape: f32[1,256], index: 9, kind: output, shape index: {}]  }
   0x1   :  { %v14_v0 = vstv %s1806_s8 }
   0x2   :  { %15 = vst [vmem:[#allocation2] sm:$0x1] %v14_v0 }
   0x3   :  { %16 = vsyncpa [#allocation4], 0 }
   0x4   :  { %18 = vsyncpa [#allocation4 + $0x1], 0  ;;  %s1538_s11 = smov 0   ;;  %s1540_s12 = smov 0  }
   0x5   :  { %s1542_s13 = smov 0   ;;  %s1544_s14 = smov 0  }
   0x6 LB: > { %s1148_s8 = sadd.s32 4294967295, %s1479_s14   ;;  %s1149_s15 = sadd.s32 4294967294, %s1479_s14   ;;  %s1479_s14 = sphi %s1544_s14, %s1813_s14   ;;  %s1475_s13 = sphi %s1542_s13, %s1812_s13   ;;  %s1471_s12 = sphi %s1540_s12, %s1811_s12   ;;  %s1467_s11 = sphi %s1538_s11, %s1810_s11  }
   0x7   : > { %s1561_s16 = sadd.s32 1, %s1479_s14   ;;  %s225_s17 = sadd.s32 1, %s1475_s13 }
   0x8   : > { %s222_s18 = ssub.s32 %s1479_s14, %s1561_s16  ;;  %p235_p0 = scmp.ne.s32.totalorder %s1475_s13, %s1471_s12 }
   0x9   : > { %p223_p1 = scmp.eq.s32.totalorder %s222_s18, 0  ;;  %p236_p2 = scmp.eq.s32.totalorder %s1148_s8, 1 }
   0xa   : > { %p241_p3 = scmp.ne.s32.totalorder %s1471_s12, %s1467_s11  ;;  %p242_p4 = scmp.eq.s32.totalorder %s1149_s15, 1 }
   0xb   : > { %s1571_s19 = scalar_select %p223_p1, %s1475_s13, %s225_s17  }
   0xc   : > { %p1573_p5 = por %p236_p2, %p235_p0  ;;  %p1577_p6 = por %p242_p4, %p241_p3 }
   0xd   : > { %p1152_p7 = scmp.ge.s32.totalorder %s1479_s14, 1  ;;  %p293_p8 = scmp.lt.s32.totalorder %s1479_s14, 3 }
   0xf   : > { %p294_p9 = pnand %p1152_p7, %p293_p8 }
  0x10   : > { %v1393_v1 = vld [vmem:[%s1799_s1] sm:$0xff] (!%p294_p9)   ;;  %s1586_s24 = sshll.u32 (!%p294_p9), %s1148_s8, 4  ;;  %v1394_v2 = vld [vmem:[%s1799_s1 + $0x8] sm:$0xff] (!%p294_p9)   ;;  %v1395_v3 = vld [vmem:[%s1799_s1 + $0x10] sm:$0xff] (!%p294_p9)   ;;  %vm398_vm0 = vcmask (!%p294_p9), 523264   ;;  %s326_s25 = sand.u32 (!%p294_p9), 1, %s1471_s12  }
  0x11   : > { %297 = sbr.rel (%p294_p9) target bundleno = 1020 (0x3fc), region = 56  ;;  %p329_p10 = scmp.lt.s32.totalorder (!%p294_p9), %s1586_s24, 31  ;;  %1242 = vmatprep.subr.bf16.mxu0 (!%p294_p9), %v1393_v1  ;;  %v1397_v4 = vld [vmem:[%s1801_s3] sm:$0xff] (!%p294_p9)   ;;  %v1398_v5 = vld [vmem:[%s1801_s3 + $0x8] sm:$0xff] (!%p294_p9)   ;;  %v1396_v8 = vld [vmem:[%s1799_s1 + $0x18] sm:$0xff] (!%p294_p9)  }
  0x12   : > { %1243 = vmatpush3.bf16.msra.mxu0 (!%p294_p9), %v1393_v1  ;;  %1266 = vmatprep.subr.bf16.mxu1 (!%p294_p9), %v1397_v4  ;;  %v1399_v10 = vld [vmem:[%s1801_s3 + $0x10] sm:$0xff] (!%p294_p9)   ;;  %v1400_v15 = vld [vmem:[%s1801_s3 + $0x18] sm:$0xff] (!%p294_p9)   ;;  %v1401_v17 = vld [vmem:[%s1801_s3 + $0x20] sm:$0xff] (!%p294_p9)   ;;  %s327_s26 = scalar_lea.vmem (!%p294_p9), [#allocation3], %s326_s25  ;;  %s1082_s30 = scalar_lea.sflag (!%p294_p9), [#allocation4], %s326_s25 }
  0x13   : > { %1244 = vmatprep.subr.bf16.mxu0 (!%p294_p9), %v1394_v2  ;;  %1267 = vmatpush3.bf16.msra.mxu1 (!%p294_p9), %v1397_v4  ;;  %v1402_v34 = vld [vmem:[%s1801_s3 + $0x28] sm:$0xff] (!%p294_p9)   ;;  %v1403_v35 = vld [vmem:[%s1801_s3 + $0x30] sm:$0xff] (!%p294_p9)   ;;  %v1404_v36 = vld [vmem:[%s1801_s3 + $0x38] sm:$0xff] (!%p294_p9)  }
  0x14   : > { %1268 = vmatprep.subr.bf16.mxu1 (!%p294_p9), %v1398_v5  ;;  %v1405_v37 = vld [vmem:[%s1803_s5] sm:$0xff] (!%p294_p9)   ;;  %v1406_v38 = vld [vmem:[%s1803_s5 + $0x8] sm:$0xff] (!%p294_p9)   ;;  %v1407_v39 = vld [vmem:[%s1803_s5 + $0x10] sm:$0xff] (!%p294_p9)  }
  0x15   : > { %v1408_v40 = vld [vmem:[%s1803_s5 + $0x18] sm:$0xff] (!%p294_p9)   ;;  %v1409_v41 = vld [vmem:[%s1803_s5 + $0x20] sm:$0xff] (!%p294_p9)   ;;  %v1410_v42 = vld [vmem:[%s1803_s5 + $0x28] sm:$0xff] (!%p294_p9)  }
  0x16   : > { %1245 = vmatpush3.bf16.msra.mxu0 (!%p294_p9), %v1394_v2  ;;  %v1673_v43 = vld [vmem:[%s1800_s2] ss:$0 sm:$0xff] (!%p294_p9) }
  0x17   : > { %1246 = vmatprep.subr.bf16.mxu0 (!%p294_p9), %v1395_v3  ;;  %1269 = vmatpush3.bf16.msra.mxu1 (!%p294_p9), %v1398_v5 }
  0x18   : > { %s330_s29 = scalar_select %p329_p10, %s1586_s24, 31  ;;  %1270 = vmatprep.subr.bf16.mxu1 %v1399_v10 }
  0x1a   : > { %s1154_s8 = sshll.u32 %s330_s29, 3  ;;  %1247 = vmatpush3.bf16.msra.mxu0 %v1395_v3  ;;  %s1756_s29 = scalar_lea.hbm %s1807_s9, %s1586_s24 }
  0x1b   : > { %s1605_s23 = scalar_lea.vmem %s1798_s0, %s1154_s8  ;;  %1248 = vmatprep.subr.bf16.mxu0 %v1396_v8  ;;  %1271 = vmatpush3.bf16.msra.mxu1 %v1399_v10  ;;  %s1484_s8 = smov [#allocation3]  }
  0x1c   : > { %v335_v6 = vld [vmem:[%s1605_s23] sm:$0xff]  ;;  %v336_v7 = vld [vmem:[%s1605_s23 + $0x8] sm:$0xff]  ;;  %v337_v11 = vld [vmem:[%s1605_s23 + $0x10] sm:$0xff]  ;;  %1272 = vmatprep.subr.bf16.mxu1 %v1400_v15  ;;  %s1421_s15 = sshll.u32 %s1484_s8, 4  ;;  %s1422_s15 = int_to_ptr.vmem [resolvable:$false] %s1421_s15 }
  0x1d   : > { %v351_v9 = vpack.c.bf16 %v336_v7, %v335_v6  ;;  %v338_v12 = vld [vmem:[%s1605_s23 + $0x18] sm:$0xff]  ;;  %v339_v13 = vld [vmem:[%s1605_s23 + $0x20] sm:$0xff]  ;;  %v340_v14 = vld [vmem:[%s1605_s23 + $0x28] sm:$0xff]  ;;  %s1423_s17 = scalar_lea.vmem %s1422_s15, 32 }
  0x1e   : > { %v352_v16 = vpack.c.bf16 %v338_v12, %v337_v11  ;;  %1249 = vmatpush3.bf16.msra.mxu0 %v1396_v8  ;;  %v353_v18 = vpack.c.bf16 %v340_v14, %v339_v13  ;;  %v341_v19 = vld [vmem:[%s1605_s23 + $0x30] sm:$0xff]  ;;  %v342_v20 = vld [vmem:[%s1605_s23 + $0x38] sm:$0xff]  ;;  %v343_v21 = vld [vmem:[%s1605_s23 + $0x40] sm:$0xff] }
  0x1f   : > { %1250 = vmatprep.mubr.msk.bf16.mxu0 %vm398_vm0, %v351_v9  ;;  %v344_v22 = vld [vmem:[%s1605_s23 + $0x48] sm:$0xff]  ;;  %1273 = vmatpush3.bf16.msra.mxu1 %v1400_v15  ;;  %v354_v23 = vpack.c.bf16 %v342_v20, %v341_v19  ;;  %v345_v25 = vld [vmem:[%s1605_s23 + $0x50] sm:$0xff]  ;;  %v346_v26 = vld [vmem:[%s1605_s23 + $0x58] sm:$0xff] }
  0x20   : > { %1274 = vmatprep.subr.bf16.mxu1 %v1401_v17  ;;  %v355_v24 = vpack.c.bf16 %v344_v22, %v343_v21  ;;  %v347_v27 = vld [vmem:[%s1605_s23 + $0x60] sm:$0xff]  ;;  %v348_v28 = vld [vmem:[%s1605_s23 + $0x68] sm:$0xff]  ;;  %v356_v29 = vpack.c.bf16 %v346_v26, %v345_v25  ;;  %v349_v31 = vld [vmem:[%s1605_s23 + $0x70] sm:$0xff]  ;;  %1298 = vmatprep.subr.bf16.mxu0 %v1405_v37 }
  0x21   : > { %1251 = vmatmul.mubr.msk.bf16.vlgmr.msra.gmra.mrb[0].mxu0 %vm398_vm0, %v352_v16  ;;  %v357_v30 = vpack.c.bf16 %v348_v28, %v347_v27  ;;  %v350_v32 = vld [vmem:[%s1605_s23 + $0x78] sm:$0xff]  ;;  %s1094_s23 = sshll.u32 %s327_s26, 4  ;;  %s1758_s23 = int_to_ptr.vmem [resolvable:$true] %s1094_s23 }
  0x22   : > { %1254 = vmatprep.mubr.msk.bf16.mxu0 %vm398_vm0, %v353_v18  ;;  %v358_v33 = vpack.c.bf16 %v350_v32, %v349_v31  ;;  %1299 = vmatpush3.bf16.msra.mxu0 %v1405_v37  ;;  %s1417_s10 = scalar_lea.vmem %s1758_s23, 16  ;;  %p1424_p0 = scmp.lt.s32.totalorder %s1758_s23, %s1422_s15 }
  0x23   : > { %1275 = vmatpush3.bf16.msra.mxu1 %v1401_v17  ;;  %1300 = vmatprep.subr.bf16.mxu0 %v1406_v38  ;;  %p1418_p11 = scmp.ne.s32.totalorder %s1758_s23, %s1417_s10  ;;  %p1425_p1 = scmp.lt.s32.totalorder %s1423_s17, %s1417_s10 }
  0x24   : > { %1276 = vmatprep.subr.bf16.mxu1 %v1402_v34 }
  0x25   : > { %p1419_p12 = pnand %p1418_p11, %p1573_p5  ;;  %p1426_p2 = por %p1425_p1, %p1424_p0 }
  0x26   : > { %1301 = vmatpush3.bf16.msra.mxu0 %v1406_v38 }
  0x27   : > { %1277 = vmatpush3.bf16.msra.mxu1 %v1402_v34  ;;  %1302 = vmatprep.subr.bf16.mxu0 %v1407_v39  ;;  %p1420_p13 = pneg %p1419_p12 }
  0x28   : > { %1278 = vmatprep.subr.bf16.mxu1 %v1403_v35 }
  0x29   : > { %1255 = vmatmul.mubr.msk.bf16.gmra.mrb[4].mxu0 %vm398_vm0, %v354_v23  ;;  %p1427_p3 = pnand %p1426_p2, %p1420_p13 }
  0x2a   : > { %1258 = vmatprep.mubr.msk.bf16.mxu0 %vm398_vm0, %v355_v24  ;;  %1303 = vmatpush3.bf16.msra.mxu0 %v1407_v39 }
  0x2b   : > { %1279 = vmatpush3.bf16.msra.mxu1 %v1403_v35  ;;  %1304 = vmatprep.subr.bf16.mxu0 %v1408_v40 }
  0x2c   : > { %1280 = vmatprep.subr.bf16.mxu1 %v1404_v36 }
  0x2e   : > { %1305 = vmatpush3.bf16.msra.mxu0 %v1408_v40 }
  0x2f   : > { %1281 = vmatpush3.bf16.msra.mxu1 %v1404_v36  ;;  %1306 = vmatprep.subr.bf16.mxu0 %v1409_v41 }
  0x31   : > { %1259 = vmatmul.mubr.msk.bf16.gmra.mrb[8].mxu0 %vm398_vm0, %v356_v29 }
  0x32   : > { %1262 = vmatprep.mubr.msk.bf16.mxu0 %vm398_vm0, %v357_v30  ;;  %1307 = vmatpush3.bf16.msra.mxu0 %v1409_v41 }
  0x33   : > { %1308 = vmatprep.subr.bf16.mxu0 %v1410_v42 }
  0x36   : > { %1309 = vmatpush3.bf16.msra.mxu0 %v1410_v42 }
  0x39   : > { %1263 = vmatmul.mubr.msk.bf16.gmra.mrb[12].mxu0 %vm398_vm0, %v358_v33 }
  0xf4   : > { %v1252_v44 = vpop.f32.mrb[0].mxu0 }
  0xf5   : > { %v466_v45 = vadd.f32 %v1252_v44, %v1673_v43  ;;  %v457_v46 = vpop.f32.mrb[1].mxu0 }
  0xf6   : > { %v458_v47 = vadd.f32 %v1673_v43, %v457_v46  ;;  %v1253_v48 = vpop.f32.mrb[2].mxu0 }
  0xf7   : > { %v538_v49 = vmul.f32 0.2, %v466_v45  ;;  %v469_v50 = vadd.f32 %v1253_v48, %v1673_v43  ;;  %v460_v51 = vpop.f32.mrb[3].mxu0  ;;  %vm522_vm1 = vcmp.gt.f32.partialorder %v466_v45, 0.0 }
  0xf8   : > { %v536_v52 = vmul.f32 0.2, %v458_v47  ;;  %v461_v53 = vadd.f32 %v1673_v43, %v460_v51  ;;  %vm520_vm3 = vcmp.gt.f32.partialorder %v458_v47, 0.0 }
  0xf9   : > { %vm523_vm2 = vcmp.gt.f32.partialorder %v469_v50, 0.0  ;;  %v539_v54 = vmul.f32 0.2, %v469_v50  ;;  %v554_v56 = vsel %vm522_vm1, %v466_v45, %v538_v49 }
  0xfa   : > { %v537_v55 = vmul.f32 0.2, %v461_v53  ;;  %vm521_vm4 = vcmp.gt.f32.partialorder %v461_v53, 0.0  ;;  %v552_v59 = vsel %vm520_vm3, %v458_v47, %v536_v52 }
  0xfb   : > { %v555_v57 = vsel %vm523_vm2, %v469_v50, %v539_v54  ;;  %v1700_v54 = vld [vmem:[%s1802_s4] ss:$0 sm:$0xff] }
  0xfc   : > { %v1256_v58 = vpop.f32.mrb[4].mxu0  ;;  %v553_v60 = vsel %vm521_vm4, %v461_v53, %v537_v55  ;;  %v569_v61 = vpack.c.bf16 %v555_v57, %v554_v56  ;;  %v1411_v53 = vld [vmem:[%s1803_s5 + $0x30] sm:$0xff]  }
  0xfd   : > { %v482_v62 = vadd.f32 %v1256_v58, %v1673_v43  ;;  %v473_v63 = vpop.f32.mrb[5].mxu0  ;;  %v568_v0 = vpack.c.bf16 %v553_v60, %v552_v59  ;;  %1310 = vmatprep.subr.bf16.mxu0 %v1411_v53 }
  0xfe   : > { %v474_v1 = vadd.f32 %v1673_v43, %v473_v63  ;;  %v1257_v2 = vpop.f32.mrb[6].mxu0  ;;  %1311 = vmatpush3.bf16.msra.mxu0 %v1411_v53 }
  0xff   : > { %vm526_vm5 = vcmp.gt.f32.partialorder %v482_v62, 0.0  ;;  %v542_v3 = vmul.f32 0.2, %v482_v62  ;;  %v485_v4 = vadd.f32 %v1257_v2, %v1673_v43  ;;  %v476_v5 = vpop.f32.mrb[7].mxu0  ;;  %1282 = vmatprep.mubr.bf16.mxu1 %v568_v0 }
 0x100   : > { %vm524_vm6 = vcmp.gt.f32.partialorder %v474_v1, 0.0  ;;  %v540_v6 = vmul.f32 0.2, %v474_v1  ;;  %v477_v7 = vadd.f32 %v1673_v43, %v476_v5  ;;  %1283 = vmatmul.mubr.bf16.vlgmr.msra.gmra.mrb[0].mxu1 %v569_v61 }
 0x101   : > { %vm527_vm7 = vcmp.gt.f32.partialorder %v485_v4, 0.0  ;;  %v543_v8 = vmul.f32 0.2, %v485_v4  ;;  %v558_v9 = vsel %vm526_vm5, %v482_v62, %v542_v3 }
 0x102   : > { %vm525_vm8 = vcmp.gt.f32.partialorder %v477_v7, 0.0  ;;  %v541_v10 = vmul.f32 0.2, %v477_v7  ;;  %v556_v11 = vsel %vm524_vm6, %v474_v1, %v540_v6 }
 0x103   : > { %v559_v12 = vsel %vm527_vm7, %v485_v4, %v543_v8 }
 0x104   : > { %v1260_v13 = vpop.f32.mrb[8].mxu0  ;;  %v557_v14 = vsel %vm525_vm8, %v477_v7, %v541_v10  ;;  %v571_v15 = vpack.c.bf16 %v559_v12, %v558_v9 }
 0x105   : > { %v498_v16 = vadd.f32 %v1260_v13, %v1673_v43  ;;  %v489_v17 = vpop.f32.mrb[9].mxu0  ;;  %v570_v18 = vpack.c.bf16 %v557_v14, %v556_v11 }
 0x106   : > { %v490_v19 = vadd.f32 %v1673_v43, %v489_v17  ;;  %v1261_v20 = vpop.f32.mrb[10].mxu0 }
 0x107   : > { %vm530_vm9 = vcmp.gt.f32.partialorder %v498_v16, 0.0  ;;  %v546_v21 = vmul.f32 0.2, %v498_v16  ;;  %v501_v22 = vadd.f32 %v1261_v20, %v1673_v43  ;;  %v492_v23 = vpop.f32.mrb[11].mxu0  ;;  %1286 = vmatprep.mubr.bf16.mxu1 %v570_v18 }
 0x108   : > { %vm528_vm10 = vcmp.gt.f32.partialorder %v490_v19, 0.0  ;;  %v544_v24 = vmul.f32 0.2, %v490_v19  ;;  %v493_v25 = vadd.f32 %v1673_v43, %v492_v23  ;;  %1287 = vmatmul.mubr.bf16.gmra.mrb[4].mxu1 %v571_v15 }
 0x109   : > { %vm531_vm11 = vcmp.gt.f32.partialorder %v501_v22, 0.0  ;;  %v547_v26 = vmul.f32 0.2, %v501_v22  ;;  %v562_v27 = vsel %vm530_vm9, %v498_v16, %v546_v21 }
 0x10a   : > { %vm529_vm12 = vcmp.gt.f32.partialorder %v493_v25, 0.0  ;;  %v545_v28 = vmul.f32 0.2, %v493_v25  ;;  %v560_v29 = vsel %vm528_vm10, %v490_v19, %v544_v24 }
 0x10b   : > { %v563_v30 = vsel %vm531_vm11, %v501_v22, %v547_v26 }
 0x10c   : > { %v561_v31 = vsel %vm529_vm12, %v493_v25, %v545_v28  ;;  %v573_v32 = vpack.c.bf16 %v563_v30, %v562_v27  ;;  %v1264_v33 = vpop.f32.mrb[12].mxu0 }
 0x10d   : > { %v572_v34 = vpack.c.bf16 %v561_v31, %v560_v29  ;;  %v514_v35 = vadd.f32 %v1264_v33, %v1673_v43  ;;  %v505_v36 = vpop.f32.mrb[13].mxu0 }
 0x10e   : > { %v506_v37 = vadd.f32 %v1673_v43, %v505_v36  ;;  %v1265_v38 = vpop.f32.mrb[14].mxu0 }
 0x10f   : > { %1290 = vmatprep.mubr.bf16.mxu1 %v572_v34  ;;  %vm534_vm13 = vcmp.gt.f32.partialorder %v514_v35, 0.0  ;;  %v550_v39 = vmul.f32 0.2, %v514_v35  ;;  %v517_v40 = vadd.f32 %v1265_v38, %v1673_v43  ;;  %v508_v41 = vpop.f32.mrb[15].mxu0 }
 0x110   : > { %1291 = vmatmul.mubr.bf16.gmra.mrb[8].mxu1 %v573_v32  ;;  %vm532_vm14 = vcmp.gt.f32.partialorder %v506_v37, 0.0  ;;  %v548_v42 = vmul.f32 0.2, %v506_v37  ;;  %v509_v44 = vadd.f32 %v1673_v43, %v508_v41  ;;  %v1412_v43 = vld [vmem:[%s1803_s5 + $0x38] sm:$0xff]  }
 0x111   : > { %vm535_vm15 = vcmp.gt.f32.partialorder %v517_v40, 0.0  ;;  %v551_v45 = vmul.f32 0.2, %v517_v40  ;;  %v566_v46 = vsel %vm534_vm13, %v514_v35, %v550_v39  ;;  %1312 = vmatprep.subr.bf16.mxu0 %v1412_v43 }
 0x112   : > { %vm533_vm0 = vcmp.gt.f32.partialorder %v509_v44, 0.0  ;;  %v549_v47 = vmul.f32 0.2, %v509_v44  ;;  %v564_v48 = vsel %vm532_vm14, %v506_v37, %v548_v42  ;;  %1313 = vmatpush3.bf16.msra.mxu0 %v1412_v43 }
 0x113   : > { %v567_v49 = vsel %vm535_vm15, %v517_v40, %v551_v45 }
 0x114   : > { %v565_v50 = vsel %vm533_vm0, %v509_v44, %v549_v47  ;;  %v575_v51 = vpack.c.bf16 %v567_v49, %v566_v46 }
 0x115   : > { %v574_v52 = vpack.c.bf16 %v565_v50, %v564_v48 }
 0x117   : > { %1294 = vmatprep.mubr.bf16.mxu1 %v574_v52 }
 0x118   : > { %1295 = vmatmul.mubr.bf16.gmra.mrb[12].mxu1 %v575_v51 }
 0x1d3   : > { %v1284_v55 = vpop.f32.mrb[0].mxu1 }
 0x1d4   : > { %v690_v56 = vadd.f32 %v1284_v55, %v1700_v54  ;;  %v681_v57 = vpop.f32.mrb[1].mxu1 }
 0x1d5   : > { %v682_v58 = vadd.f32 %v1700_v54, %v681_v57  ;;  %v1285_v59 = vpop.f32.mrb[2].mxu1 }
 0x1d6   : > { %v762_v60 = vmul.f32 0.2, %v690_v56  ;;  %v693_v61 = vadd.f32 %v1285_v59, %v1700_v54  ;;  %v684_v62 = vpop.f32.mrb[3].mxu1  ;;  %vm746_vm1 = vcmp.gt.f32.partialorder %v690_v56, 0.0 }
 0x1d7   : > { %v760_v63 = vmul.f32 0.2, %v682_v58  ;;  %v685_v0 = vadd.f32 %v1700_v54, %v684_v62  ;;  %vm744_vm2 = vcmp.gt.f32.partialorder %v682_v58, 0.0 }
 0x1d8   : > { %vm747_vm3 = vcmp.gt.f32.partialorder %v693_v61, 0.0  ;;  %v763_v1 = vmul.f32 0.2, %v693_v61  ;;  %v778_v3 = vsel %vm746_vm1, %v690_v56, %v762_v60  ;;  %vm1482_vm1 = vmmov 0  }
 0x1d9   : > { %vm745_vm4 = vcmp.gt.f32.partialorder %v685_v0, 0.0  ;;  %v761_v2 = vmul.f32 0.2, %v685_v0  ;;  %v776_v7 = vsel %vm744_vm2, %v682_v58, %v760_v63 }
 0x1da   : > { %v779_v4 = vsel %vm747_vm3, %v693_v61, %v763_v1  ;;  %v1025_v1 = vld [vmem:[#allocation2] sm:$0x1] }
 0x1db   : > { %v793_v5 = vpack.c.bf16 %v779_v4, %v778_v3  ;;  %v1288_v6 = vpop.f32.mrb[4].mxu1  ;;  %v777_v8 = vsel %vm745_vm4, %v685_v0, %v761_v2  ;;  %v1481_v0 = vmov 0.0   ;;  %v1723_v2 = vld [vmem:[%s1804_s6] ss:$0 sm:$0xff] }
 0x1dc   : > { %v706_v9 = vadd.f32 %v1288_v6, %v1700_v54  ;;  %v697_v10 = vpop.f32.mrb[5].mxu1  ;;  %v792_v11 = vpack.c.bf16 %v777_v8, %v776_v7  ;;  %1330 = vmatprep.subr.bf16.mxu1 %v1481_v0  ;;  %1346 = vmatprep.mubr.msk.bf16.mxu1 %vm1482_vm1, %v1481_v0 }
 0x1dd   : > { %v698_v12 = vadd.f32 %v1700_v54, %v697_v10  ;;  %v1289_v13 = vpop.f32.mrb[6].mxu1 }
 0x1de   : > { %v766_v14 = vmul.f32 0.2, %v706_v9  ;;  %v709_v15 = vadd.f32 %v1289_v13, %v1700_v54  ;;  %v700_v16 = vpop.f32.mrb[7].mxu1  ;;  %1314 = vmatprep.mubr.bf16.mxu0 %v792_v11  ;;  %vm750_vm5 = vcmp.gt.f32.partialorder %v706_v9, 0.0 }
 0x1df   : > { %v764_v17 = vmul.f32 0.2, %v698_v12  ;;  %v701_v18 = vadd.f32 %v1700_v54, %v700_v16  ;;  %1315 = vmatmul.mubr.bf16.vlgmr.msra.gmra.mrb[16].mxu0 %v793_v5  ;;  %vm748_vm6 = vcmp.gt.f32.partialorder %v698_v12, 0.0 }
 0x1e0   : > { %vm751_vm7 = vcmp.gt.f32.partialorder %v709_v15, 0.0  ;;  %v767_v19 = vmul.f32 0.2, %v709_v15  ;;  %v782_v21 = vsel %vm750_vm5, %v706_v9, %v766_v14 }
 0x1e1   : > { %vm749_vm8 = vcmp.gt.f32.partialorder %v701_v18, 0.0  ;;  %v765_v20 = vmul.f32 0.2, %v701_v18  ;;  %v780_v24 = vsel %vm748_vm6, %v698_v12, %v764_v17 }
 0x1e2   : > { %v783_v22 = vsel %vm751_vm7, %v709_v15, %v767_v19 }
 0x1e3   : > { %v1292_v23 = vpop.f32.mrb[8].mxu1  ;;  %v781_v25 = vsel %vm749_vm8, %v701_v18, %v765_v20  ;;  %v795_v26 = vpack.c.bf16 %v783_v22, %v782_v21 }
 0x1e4   : > { %v722_v27 = vadd.f32 %v1292_v23, %v1700_v54  ;;  %v713_v28 = vpop.f32.mrb[9].mxu1  ;;  %v794_v29 = vpack.c.bf16 %v781_v25, %v780_v24 }
 0x1e5   : > { %v714_v30 = vadd.f32 %v1700_v54, %v713_v28  ;;  %v1293_v31 = vpop.f32.mrb[10].mxu1 }
 0x1e6   : > { %vm754_vm9 = vcmp.gt.f32.partialorder %v722_v27, 0.0  ;;  %v770_v32 = vmul.f32 0.2, %v722_v27  ;;  %v725_v33 = vadd.f32 %v1293_v31, %v1700_v54  ;;  %v716_v34 = vpop.f32.mrb[11].mxu1  ;;  %1318 = vmatprep.mubr.bf16.mxu0 %v794_v29 }
 0x1e7   : > { %vm752_vm10 = vcmp.gt.f32.partialorder %v714_v30, 0.0  ;;  %v768_v35 = vmul.f32 0.2, %v714_v30  ;;  %v717_v36 = vadd.f32 %v1700_v54, %v716_v34  ;;  %1319 = vmatmul.mubr.bf16.gmra.mrb[20].mxu0 %v795_v26 }
 0x1e8   : > { %vm755_vm11 = vcmp.gt.f32.partialorder %v725_v33, 0.0  ;;  %v771_v37 = vmul.f32 0.2, %v725_v33  ;;  %v786_v38 = vsel %vm754_vm9, %v722_v27, %v770_v32 }
 0x1e9   : > { %vm753_vm12 = vcmp.gt.f32.partialorder %v717_v36, 0.0  ;;  %v769_v39 = vmul.f32 0.2, %v717_v36  ;;  %v784_v40 = vsel %vm752_vm10, %v714_v30, %v768_v35 }
 0x1ea   : > { %v787_v41 = vsel %vm755_vm11, %v725_v33, %v771_v37 }
 0x1eb   : > { %v785_v42 = vsel %vm753_vm12, %v717_v36, %v769_v39  ;;  %v797_v44 = vpack.c.bf16 %v787_v41, %v786_v38  ;;  %v1296_v45 = vpop.f32.mrb[12].mxu1 }
 0x1ec   : > { %v796_v46 = vpack.c.bf16 %v785_v42, %v784_v40  ;;  %v738_v47 = vadd.f32 %v1296_v45, %v1700_v54  ;;  %v729_v48 = vpop.f32.mrb[13].mxu1 }
 0x1ed   : > { %v730_v49 = vadd.f32 %v1700_v54, %v729_v48  ;;  %v1297_v50 = vpop.f32.mrb[14].mxu1 }
 0x1ee   : > { %1322 = vmatprep.mubr.bf16.mxu0 %v796_v46  ;;  %vm758_vm13 = vcmp.gt.f32.partialorder %v738_v47, 0.0  ;;  %v774_v51 = vmul.f32 0.2, %v738_v47  ;;  %v741_v52 = vadd.f32 %v1297_v50, %v1700_v54  ;;  %v732_v53 = vpop.f32.mrb[15].mxu1 }
 0x1ef   : > { %1323 = vmatmul.mubr.bf16.gmra.mrb[24].mxu0 %v797_v44  ;;  %vm756_vm14 = vcmp.gt.f32.partialorder %v730_v49, 0.0  ;;  %v772_v43 = vmul.f32 0.2, %v730_v49  ;;  %v733_v55 = vadd.f32 %v1700_v54, %v732_v53  ;;  %v1483_v54 = vmov 0  }
 0x1f0   : > { %vm759_vm15 = vcmp.gt.f32.partialorder %v741_v52, 0.0  ;;  %v775_v56 = vmul.f32 0.2, %v741_v52  ;;  %v790_v57 = vsel %vm758_vm13, %v738_v47, %v774_v51  ;;  %1392 = vset.pattern.permute.xlu0 %v1483_v54 }
 0x1f1   : > { %vm757_vm0 = vcmp.gt.f32.partialorder %v733_v55, 0.0  ;;  %v773_v58 = vmul.f32 0.2, %v733_v55  ;;  %v788_v59 = vsel %vm756_vm14, %v730_v49, %v772_v43  ;;  %1028 = vperm.xlu0 %1392, %v1025_v1  }
 0x1f2   : > { %v791_v60 = vsel %vm759_vm15, %v741_v52, %v775_v56 }
 0x1f3   : > { %v789_v61 = vsel %vm757_vm0, %v733_v55, %v773_v58  ;;  %v799_v62 = vpack.c.bf16 %v791_v60, %v790_v57 }
 0x1f4   : > { %v798_v63 = vpack.c.bf16 %v789_v61, %v788_v59 }
 0x1f6   : > { %1326 = vmatprep.mubr.bf16.mxu0 %v798_v63 }
 0x1f7   : > { %1327 = vmatmul.mubr.bf16.gmra.mrb[28].mxu0 %v799_v62 }
 0x2b2   : > { %v1316_v3 = vpop.f32.mrb[16].mxu0 }
 0x2b3   : > { %v914_v4 = vadd.f32 %v1316_v3, %v1723_v2  ;;  %v905_v5 = vpop.f32.mrb[17].mxu0 }
 0x2b4   : > { %v906_v6 = vadd.f32 %v1723_v2, %v905_v5  ;;  %v1317_v7 = vpop.f32.mrb[18].mxu0 }
 0x2b5   : > { %v986_v8 = vmul.f32 0.2, %v914_v4  ;;  %v917_v9 = vadd.f32 %v1317_v7, %v1723_v2  ;;  %v908_v10 = vpop.f32.mrb[19].mxu0  ;;  %vm970_vm2 = vcmp.gt.f32.partialorder %v914_v4, 0.0 }
 0x2b6   : > { %v984_v11 = vmul.f32 0.2, %v906_v6  ;;  %v909_v12 = vadd.f32 %v1723_v2, %v908_v10  ;;  %vm968_vm3 = vcmp.gt.f32.partialorder %v906_v6, 0.0 }
 0x2b7   : > { %vm971_vm4 = vcmp.gt.f32.partialorder %v917_v9, 0.0  ;;  %v987_v13 = vmul.f32 0.2, %v917_v9  ;;  %v1002_v15 = vsel %vm970_vm2, %v914_v4, %v986_v8 }
 0x2b8   : > { %vm969_vm5 = vcmp.gt.f32.partialorder %v909_v12, 0.0  ;;  %v985_v14 = vmul.f32 0.2, %v909_v12  ;;  %v1000_v17 = vsel %vm968_vm3, %v906_v6, %v984_v11 }
 0x2b9   : > { %v1003_v16 = vsel %vm971_vm4, %v917_v9, %v987_v13  ;;  %v1031_v13 = vlaneseq }
 0x2ba   : > { %v1017_v18 = vpack.c.bf16 %v1003_v16, %v1002_v15  ;;  %v1001_v19 = vsel %vm969_vm5, %v909_v12, %v985_v14  ;;  %v1320_v20 = vpop.f32.mrb[20].mxu0  ;;  %v1029_v16 = vpop.permute.xlu0 %1028 }
 0x2bb   : > { %v1016_v21 = vpack.c.bf16 %v1001_v19, %v1000_v17  ;;  %v930_v22 = vadd.f32 %v1320_v20, %v1723_v2  ;;  %v921_v23 = vpop.f32.mrb[21].mxu0  ;;  %v1032_v14 = vshrl.u32 %v1031_v13, 7 }
 0x2bc   : > { %v922_v24 = vadd.f32 %v1723_v2, %v921_v23  ;;  %v1321_v25 = vpop.f32.mrb[22].mxu0 }
 0x2bd   : > { %v990_v26 = vmul.f32 0.2, %v930_v22  ;;  %v933_v27 = vadd.f32 %v1321_v25, %v1723_v2  ;;  %v924_v28 = vpop.f32.mrb[23].mxu0  ;;  %1331 = vmatpush3.bf16.xpose.msra.mxu1 %v1016_v21  ;;  %vm974_vm6 = vcmp.gt.f32.partialorder %v930_v22, 0.0  ;;  %v1033_v15 = vsub.s32 0, %v1032_v14 }
 0x2be   : > { %v988_v29 = vmul.f32 0.2, %v922_v24  ;;  %v925_v30 = vadd.f32 %v1723_v2, %v924_v28  ;;  %1332 = vmatprep.subr.bf16.mxu1 %v1481_v0  ;;  %vm972_vm7 = vcmp.gt.f32.partialorder %v922_v24, 0.0 }
 0x2bf   : > { %vm975_vm8 = vcmp.gt.f32.partialorder %v933_v27, 0.0  ;;  %v991_v31 = vmul.f32 0.2, %v933_v27  ;;  %v1006_v33 = vsel %vm974_vm6, %v930_v22, %v990_v26  ;;  %v1034_v17 = vrot.slane %v1029_v16, %v1033_v15 }
 0x2c0   : > { %vm973_vm9 = vcmp.gt.f32.partialorder %v925_v30, 0.0  ;;  %v989_v32 = vmul.f32 0.2, %v925_v30  ;;  %v1004_v35 = vsel %vm972_vm7, %v922_v24, %v988_v29 }
 0x2c1   : > { %v1007_v34 = vsel %vm975_vm8, %v933_v27, %v991_v31 }
 0x2c2   : > { %v1019_v36 = vpack.c.bf16 %v1007_v34, %v1006_v33  ;;  %v1005_v37 = vsel %vm973_vm9, %v925_v30, %v989_v32  ;;  %v1324_v38 = vpop.f32.mrb[24].mxu0 }
 0x2c3   : > { %v1018_v39 = vpack.c.bf16 %v1005_v37, %v1004_v35  ;;  %v946_v40 = vadd.f32 %v1324_v38, %v1723_v2  ;;  %v937_v41 = vpop.f32.mrb[25].mxu0 }
 0x2c4   : > { %v938_v42 = vadd.f32 %v1723_v2, %v937_v41  ;;  %v1325_v44 = vpop.f32.mrb[26].mxu0 }
 0x2c5   : > { %vm978_vm10 = vcmp.gt.f32.partialorder %v946_v40, 0.0  ;;  %v994_v45 = vmul.f32 0.2, %v946_v40  ;;  %v949_v46 = vadd.f32 %v1325_v44, %v1723_v2  ;;  %v940_v47 = vpop.f32.mrb[27].mxu0  ;;  %1333 = vmatpush3.bf16.xpose.msra.mxu1 %v1017_v18 }
 0x2c6   : > { %vm976_vm11 = vcmp.gt.f32.partialorder %v938_v42, 0.0  ;;  %v992_v48 = vmul.f32 0.2, %v938_v42  ;;  %v941_v49 = vadd.f32 %v1723_v2, %v940_v47  ;;  %1334 = vmatprep.subr.bf16.mxu1 %v1481_v0 }
 0x2c7   : > { %v1010_v50 = vsel %vm978_vm10, %v946_v40, %v994_v45  ;;  %vm979_vm12 = vcmp.gt.f32.partialorder %v949_v46, 0.0  ;;  %v995_v51 = vmul.f32 0.2, %v949_v46 }
 0x2c8   : > { %v1008_v52 = vsel %vm976_vm11, %v938_v42, %v992_v48  ;;  %vm977_vm13 = vcmp.gt.f32.partialorder %v941_v49, 0.0  ;;  %v993_v53 = vmul.f32 0.2, %v941_v49 }
 0x2c9   : > { %v1011_v43 = vsel %vm979_vm12, %v949_v46, %v995_v51 }
 0x2ca   : > { %v1021_v55 = vpack.c.bf16 %v1011_v43, %v1010_v50  ;;  %v1009_v56 = vsel %vm977_vm13, %v941_v49, %v993_v53  ;;  %v1328_v57 = vpop.f32.mrb[28].mxu0 }
 0x2cb   : > { %v1020_v58 = vpack.c.bf16 %v1009_v56, %v1008_v52  ;;  %v962_v59 = vadd.f32 %v1328_v57, %v1723_v2  ;;  %v953_v60 = vpop.f32.mrb[29].mxu0 }
 0x2cc   : > { %v954_v61 = vadd.f32 %v1723_v2, %v953_v60  ;;  %v1329_v62 = vpop.f32.mrb[30].mxu0 }
 0x2cd   : > { %1335 = vmatpush3.bf16.xpose.msra.mxu1 %v1018_v39  ;;  %vm982_vm14 = vcmp.gt.f32.partialorder %v962_v59, 0.0  ;;  %v998_v63 = vmul.f32 0.2, %v962_v59  ;;  %v965_v1 = vadd.f32 %v1329_v62, %v1723_v2  ;;  %v956_v54 = vpop.f32.mrb[31].mxu0 }
 0x2ce   : > { %vm980_vm15 = vcmp.gt.f32.partialorder %v954_v61, 0.0  ;;  %v996_v3 = vmul.f32 0.2, %v954_v61  ;;  %v957_v4 = vadd.f32 %v1723_v2, %v956_v54  ;;  %1336 = vmatprep.subr.bf16.mxu1 %v1481_v0  ;;  %v1024_v2 = vld [vmem:[%s1805_s7] sm:$0x1] }
 0x2cf   : > { %v1014_v5 = vsel %vm982_vm14, %v962_v59, %v998_v63  ;;  %vm983_vm0 = vcmp.gt.f32.partialorder %v965_v1, 0.0  ;;  %v999_v6 = vmul.f32 0.2, %v965_v1 }
 0x2d0   : > { %v1012_v7 = vsel %vm980_vm15, %v954_v61, %v996_v3  ;;  %vm981_vm1 = vcmp.gt.f32.partialorder %v957_v4, 0.0  ;;  %v997_v8 = vmul.f32 0.2, %v957_v4 }
 0x2d1   : > { %v1015_v9 = vsel %vm983_vm0, %v965_v1, %v999_v6 }
 0x2d2   : > { %v1023_v10 = vpack.c.bf16 %v1015_v9, %v1014_v5  ;;  %v1013_v11 = vsel %vm981_vm1, %v957_v4, %v997_v8 }
 0x2d3   : > { %v1022_v12 = vpack.c.bf16 %v1013_v11, %v1012_v7 }
 0x2d5   : > { %1337 = vmatpush3.bf16.xpose.msra.mxu1 %v1019_v36 }
 0x2d6   : > { %1338 = vmatprep.subr.bf16.mxu1 %v1481_v0 }
 0x2dd   : > { %1339 = vmatpush3.bf16.xpose.msra.mxu1 %v1020_v58 }
 0x2de   : > { %1340 = vmatprep.subr.bf16.mxu1 %v1481_v0 }
 0x2e5   : > { %1341 = vmatpush3.bf16.xpose.msra.mxu1 %v1021_v55 }
 0x2e6   : > { %1342 = vmatprep.subr.bf16.mxu1 %v1481_v0 }
 0x2ed   : > { %1343 = vmatpush3.bf16.xpose.msra.mxu1 %v1022_v12 }
 0x2ee   : > { %1344 = vmatprep.subr.bf16.mxu1 %v1481_v0 }
 0x2f5   : > { %1345 = vmatpush3.bf16.xpose.msra.mxu1 %v1023_v10 }
 0x2fc   : > { %1347 = vmatmul.mubr.bf16.vlgmr.msra.gmra.mrb[16].mxu1 %v1024_v2 }
 0x3cf   : > { %v1069_v18 = vpop.f32.mrb[16].mxu1 }
 0x3d0   : > { %v1070_v19 = vadd.f32 %v1069_v18, %v1034_v17  ;;  %v1348_v20 = vpop.f32.mrb[17].mxu1 }
 0x3d1   : > { %v1072_v21 = vpop.f32.mrb[18].mxu1 }
 0x3d2   : > { %v1075_v22 = vsub.f32 0.0, %v1070_v19  ;;  %v1349_v23 = vpop.f32.mrb[19].mxu1 }
 0x3d4   : > { %v1076_v0 = vmul.f32 1.442695, %v1075_v22 }
 0x3d6   : > { %1413 = vpow2.f32 %v1076_v0 }
 0x3e0   : > { %v1414_v24 = vpop.eup %1413 }
 0x3e1   : > { %v1078_v25 = vadd.f32 1.0, %v1414_v24 }
 0x3e3   : > { %1415 = vrcp.f32 %v1078_v25 }
 0x3ed   : > { %v1416_v26 = vpop.eup %1415 }
 0x3ee   : > { %1080 = vst [vmem:[%s327_s26] sm:$0x1] %v1416_v26 }
 0x3ef   : > { %1430 = shalt.err (!%p1427_p3)
}
 0x3f0   : > { %s1431_s24 = scalar_lea.hbm %s1756_s29, 16  ;;  %s1435_s25 = scalar_lea.hbm %s1807_s9, 32 }
 0x3f1   : > { %p1432_p4 = scmp.ne.s32.totalorder %s1756_s29, %s1431_s24  ;;  %p1436_p9 = scmp.lt.u32.totalorder %s1756_s29, %s1807_s9 }
 0x3f2   : > { %p1437_p10 = scmp.lt.u32.totalorder %s1435_s25, %s1431_s24  ;;  %p1439_p12 = scmp.lt.u32.totalorder %s1431_s24, %s1756_s29 }
 0x3f3   : > { %p1433_p7 = pnand %p1432_p4, %p1573_p5 }
 0x3f4   : > { %p1438_p11 = por %p1437_p10, %p1436_p9 }
 0x3f5   : > { %p1434_p8 = pneg %p1433_p7 }
 0x3f6   : > { %p1440_p13 = por %p1439_p12, %p1438_p11 }
 0x3f8   : > { %p1441_p0 = pnand %p1440_p13, %p1434_p8 }
 0x3fa   : > { %1444 = shalt.err (!%p1441_p0)
}
 0x3fb   : > { %1350 = dma.vmem_to_hbm [thread:$0]  (%p1573_p5), %s1758_s23, 16, %s1756_s29, %s1082_s30  }
 0x3fc PF: > { %p1356_p1 = scmp.ge.s32.totalorder %s1479_s14, 2  ;;  %s1106_s28 = sand.u32 1, %s1467_s11  }
 0x3fd   : > { %s1107_s10 = scalar_lea.sflag [#allocation4], %s1106_s28 }
 0x3fe   : > { %p1353_p2 = pnand %p1356_p1, %p1577_p6 }
 0x400   : > { %1462 = dma.done.wait (!%p1353_p2), %s1107_s10, 16  }
 0x401   : > { %1464 = vsyncadd (!%p1353_p2), %s1107_s10, 4294967280  ;;  %p21_p3 = scmp.ge.s32.totalorder %s1561_s16, 4   ;;  %s1810_s11 = smov %s1471_s12 }
 0x402   : > { %s1811_s12 = smov %s1475_s13  ;;  %s1812_s13 = smov %s1571_s19 }
 0x403   : > { %s1813_s14 = smov %s1561_s16  ;;  %23 = sbr.rel (!%p21_p3) target bundleno = 6 (0x6), region = 91 }
 0x40a   :  { %1111 = vsyncpa [#allocation4], 1 }
 0x40b   :  { %1113 = vsyncpa [#allocation4 + $0x1], 1 }

</bundles_post_ra>
